<compile_context>
chip_gen: v7x
topology: tpu7x:2x2x1
jax: 0.10.0
libtpu: 0.0.40
codegen_flags: <defaults>
</compile_context>

<pallas_src>
import math
from functools import partial

import jax
import jax.numpy as jnp
from jax.experimental import pallas as pl
from jax.experimental.pallas import tpu as pltpu


def _drop_path_kernel(scale_ref, x_ref, o_ref):
    """One grid step scales a (TB, TL) block by a per-sample (TB, 1) factor.

    scale_ref : VMEM (TB, 1) f32  — 0.0 for dropped samples, 1/keep_prob kept
    x_ref     : VMEM (TB, TL) input block
    o_ref     : VMEM (TB, TL) output block
    """
    # Multiply in f32 for accuracy, cast once on store (VPU-only hot path).
    o_ref[...] = (x_ref[...].astype(jnp.float32) * scale_ref[...]).astype(o_ref.dtype)


def _per_sample_scale(key, batch, drop_prob):
    """(B,) f32 scale. Keep a sample iff floor(keep_prob + u) == 1 <=> u >= p."""
    keep_prob = 1.0 - float(drop_prob)
    u = jax.random.uniform(key, (batch,), dtype=jnp.float32)
    return jnp.where(u >= drop_prob, 1.0 / keep_prob, 0.0).astype(jnp.float32)


def _pick_tile(dim, unit, max_elems):
    """Tile along `dim`: the full dim if it fits `max_elems`, else the largest
    divisor of `dim` that is a multiple of `unit` and <= max_elems
    (falls back to the full dim when no such divisor exists)."""
    if dim <= max_elems:
        return dim
    best = None
    t = unit
    limit = min(dim, max_elems)
    while t <= limit:
        if dim % t == 0:
            best = t
        t += unit
    return best if best is not None else dim


def drop_path(x, drop_prob, training, key):
    """Pallas DropPath. x: (B, ...). Returns array of same shape/dtype."""
    if drop_prob is None or drop_prob == 0.0 or not training:
        return x
    if drop_prob >= 1.0:
        # All paths dropped; avoid 1/keep_prob division by zero at trace time.
        return jnp.zeros_like(x)

    orig_shape = x.shape
    B = orig_shape[0]
    L = int(math.prod(orig_shape[1:]))
    x2 = x.reshape(B, L)

    # Per-sample scale precomputed in plain JAX glue; kernel just multiplies.
    scale = _per_sample_scale(key, B, drop_prob).reshape(B, 1)

    # ~4 MiB blocks keep 2x(in+out) double-buffering well under scoped VMEM on
    # v5e/v6e/v7x while being large enough to hit the HBM roofline.
    itemsize = jnp.dtype(x.dtype).itemsize
    budget_elems = max(1, (4 * 1024 * 1024) // itemsize)
    TL = _pick_tile(L, 128, budget_elems)
    TB = _pick_tile(B, 8, max(1, budget_elems // TL))

    # Give v7x's second TensorCore something to do when the whole tensor fits
    # in one block (only split in ways that keep divisibility / 128-multiples).
    if (B // TB) * (L // TL) < 2:
        if TL % 256 == 0:
            TL //= 2
        elif TB % 16 == 0:
            TB //= 2

    grid = (B // TB, L // TL)

    out2 = pl.pallas_call(
        _drop_path_kernel,
        out_shape=jax.ShapeDtypeStruct((B, L), x.dtype),
        grid=grid,
        in_specs=[
            pl.BlockSpec((TB, 1), lambda i, j: (i, 0)),    # per-sample scale
            pl.BlockSpec((TB, TL), lambda i, j: (i, j)),   # input block
        ],
        out_specs=pl.BlockSpec((TB, TL), lambda i, j: (i, j)),
        compiler_params=pltpu.CompilerParams(
            dimension_semantics=("parallel", "parallel"),
            vmem_limit_bytes=32 * 1024 * 1024,
        ),
    )(scale, x2)

    return out2.reshape(orig_shape)


class DropPath:
    """Minimal JAX/Pallas counterpart of the PyTorch DropPath module."""

    def __init__(self, drop_prob=None):
        self.drop_prob = drop_prob
        self.training = True

    def __call__(self, x, key):
        return drop_path(x, self.drop_prob, self.training, key)


def _reference_drop_path(x, scale):
    """Pure-JAX reference using the same precomputed per-sample scale."""
    s = scale.reshape((x.shape[0],) + (1,) * (x.ndim - 1))
    return (x.astype(jnp.float32) * s).astype(x.dtype)


if __name__ == "__main__":
    key = jax.random.PRNGKey(0)
    k_x, k_drop = jax.random.split(key)

    B, N, C = 2, 8, 32
    x = jax.random.normal(k_x, (B, N, C), dtype=jnp.float32)

    module = DropPath(drop_prob=0.25)
    module.training = True

    out = jax.block_until_ready(module(x, k_drop))

    # Verify against pure-JAX reference using the same per-sample scale.
    scale = _per_sample_scale(k_drop, B, 0.25)
    ref = _reference_drop_path(x, scale)
    assert out.shape == x.shape and out.dtype == x.dtype
    assert jnp.allclose(out, ref, atol=1e-6, rtol=1e-6)

    # Eval mode passthrough.
    module.training = False
    out_eval = jax.block_until_ready(module(x, k_drop))
    assert jnp.array_equal(out_eval, x)

    # drop_prob = 0 passthrough.
    module.training = True
    module.drop_prob = 0.0
    assert jnp.array_equal(jax.block_until_ready(module(x, k_drop)), x)

    # drop_prob = 1.0 edge case (all samples dropped, no 1/0 at trace time).
    module.drop_prob = 1.0
    out_all_drop = jax.block_until_ready(module(x, k_drop))
    assert jnp.array_equal(out_all_drop, jnp.zeros_like(x))

    print("KERNEL_OK")
</pallas_src>

<mosaic_0001>
module attributes {stable_mosaic.version = 11 : i64} {
  func.func @_drop_path_kernel(%arg0: i32, %arg1: i32, %arg2: memref<2x1xf32, #tpu.memory_space<vmem>>, %arg3: memref<2x128xf32, #tpu.memory_space<vmem>>, %arg4: memref<2x128xf32, #tpu.memory_space<vmem>>) attributes {dimension_semantics = [#tpu.dimension_semantics<parallel>, #tpu.dimension_semantics<parallel>], iteration_bounds = array<i64: 1, 2>, scalar_prefetch = 0 : i64, scratch_operands = 0 : i64, tpu.core_type = #tpu.core_type<tc>, window_params = [{transform_indices = @transform_0, window_bounds = array<i64: 2, 1>}, {transform_indices = @transform_1, window_bounds = array<i64: 2, 128>}, {transform_indices = @transform_2, window_bounds = array<i64: 2, 128>}]} {
    %c0 = arith.constant 0 : index
    %c0_0 = arith.constant 0 : index
    %0 = vector.load %arg3[%c0, %c0_0] : memref<2x128xf32, #tpu.memory_space<vmem>>, vector<2x128xf32>
    %c0_1 = arith.constant 0 : index
    %c0_2 = arith.constant 0 : index
    %1 = vector.load %arg2[%c0_1, %c0_2] : memref<2x1xf32, #tpu.memory_space<vmem>>, vector<2x1xf32>
    %2 = vector.broadcast %1 : vector<2x1xf32> to vector<2x128xf32>
    %3 = arith.mulf %0, %2 : vector<2x128xf32>
    %c0_3 = arith.constant 0 : index
    %c0_4 = arith.constant 0 : index
    %4 = vector.load %arg4[%c0_3, %c0_4] : memref<2x128xf32, #tpu.memory_space<vmem>>, vector<2x128xf32>
    tpu.vector_store %arg4[%c0_3, %c0_4], %3 {strides = array<i32>} : memref<2x128xf32, #tpu.memory_space<vmem>>, vector<2x128xf32>,
    return
  }
  func.func @transform_0(%arg0: i32, %arg1: i32) -> (i32, i32) {
    %c0_i32 = arith.constant 0 : i32
    %c0_i32_0 = arith.constant 0 : i32
    return %arg0, %c0_i32 : i32, i32
  }
  func.func @transform_1(%arg0: i32, %arg1: i32) -> (i32, i32) {
    %c0_i32 = arith.constant 0 : i32
    return %arg0, %arg1 : i32, i32
  }
  func.func @transform_2(%arg0: i32, %arg1: i32) -> (i32, i32) {
    %c0_i32 = arith.constant 0 : i32
    return %arg0, %arg1 : i32, i32
  }
}

</mosaic_0001>

<bundles_post_ra>
// kernel: tpu_custom_call.1
= control target key start
LH: loop header
LB: loop body
LE: loop exit
PB: predicated region body
PF: predicated region fallthrough
CT: control target
= control target key end

     0   :  { %7 = vsyncpa [#allocation3], 0  ;;  %s580_s0 = inlined_call_operand.vmem [shape: f32[2,1], index: 0, kind: input, shape index: {}]   ;;  %s581_s1 = inlined_call_operand.vmem [shape: f32[2,256], index: 1, kind: input, shape index: {}]   ;;  %s582_s2 = inlined_call_operand.hbm [shape: f32[2,256], index: 2, kind: output, shape index: {}]  }
   0x1   :  { %9 = vsyncpa [#allocation3 + $0x1], 0  ;;  %s465_s9 = smov 0   ;;  %s467_s10 = smov 0  }
   0x2   :  { %s469_s11 = smov 0   ;;  %s471_s12 = smov 0  }
   0x3   :  { %s473_s13 = smov 0   ;;  %s475_s14 = smov 0  }
   0x4 LB: > { %s299_s15 = sadd.s32 4294967295, %s446_s14   ;;  %s300_s16 = sadd.s32 4294967294, %s446_s14   ;;  %s446_s14 = sphi %s475_s14, %s15_s14   ;;  %s442_s13 = sphi %s473_s13, %s589_s13   ;;  %s438_s12 = sphi %s471_s12, %s588_s12   ;;  %s434_s11 = sphi %s469_s11, %s587_s11   ;;  %s430_s10 = sphi %s467_s10, %s586_s10   ;;  %s426_s9 = sphi %s465_s9, %s585_s9  }
   0x5   : > { %s24_s17 = sadd.s32 1, %s442_s13  ;;  %s90_s18 = sadd.s32 1, %s434_s11 }
   0x6   : > { %p25_p0 = scmp.ge.s32.totalorder %s24_s17, 2  ;;  %p100_p1 = scmp.ne.s32.totalorder %s434_s11, %s430_s10 }
   0x7   : > { %p101_p2 = scmp.eq.s32.totalorder %s299_s15, 1  ;;  %p106_p3 = scmp.ne.s32.totalorder %s430_s10, %s426_s9 }
   0x8   : > { %s591_s17 = smov (%p25_p0, %s24_s17), 0  ;;  %p107_p5 = scmp.eq.s32.totalorder %s300_s16, 1 }
   0x9   : > { %p505_p4 = por %p101_p2, %p100_p1  ;;  %s86_s20 = ssub.s32 %s442_s13, %s591_s17 }
   0xa   : > { %p304_p6 = scmp.ge.s32.totalorder %s446_s14, 1  ;;  %p88_p7 = scmp.eq.s32.totalorder %s86_s20, 0 }
   0xb   : > { %p512_p8 = por %p107_p5, %p106_p3  ;;  %p143_p9 = scmp.lt.s32.totalorder %s446_s14, 3 }
   0xc   : > { %s518_s22 = scalar_select %p88_p7, %s434_s11, %s90_s18  }
   0xd   : > { %p144_p10 = pnand %p304_p6, %p143_p9 }
   0xe   : > { %v185_v0 = vld [vmem:[%s580_s0] sm:$0x3] (!%p144_p10)  ;;  %v448_v1 = vmov (!%p144_p10), 0   ;;  %p178_p11 = scmp.lt.s32.totalorder (!%p144_p10), %s438_s12, 1  ;;  %s169_s26 = sand.u32 (!%p144_p10), 1, %s430_s10  }
   0xf   : > { %147 = sbr.rel (%p144_p10) target bundleno = 160 (0xa0), region = 28  ;;  %367 = vset.pattern.permute.xlu0 (!%p144_p10), %v448_v1  ;;  %s305_s27 = sshll.u32 (!%p144_p10), %s169_s26, 1 }
  0x10   : > { %188 = vperm.xlu0 (!%p144_p10), %367, %v185_v0   ;;  %s308_s4 = sshll.u32 (!%p144_p10), %s438_s12, 5  ;;  %s171_s5 = scalar_lea.vmem (!%p144_p10), [#allocation2], %s305_s27 }
  0x11   : > { %s209_s6 = sshll.u32 (!%p144_p10), %s171_s5, 4  ;;  %s533_s15 = scalar_lea.hbm (!%p144_p10), %s582_s2, %s308_s4  ;;  %s535_s6 = int_to_ptr.vmem [resolvable:$true] %s209_s6 }
  0x12   : > { %s194_s16 = scalar_lea.sflag (!%p144_p10), [#allocation3], %s169_s26  ;;  %s368_s18 = scalar_lea.vmem (!%p144_p10), %s535_s6, 32 }
  0x13   : > { %p369_p12 = scmp.ne.s32.totalorder (!%p144_p10), %s535_s6, %s368_s18 }
  0x15   : > { %p370_p13 = pnand (!%p144_p10), %p369_p12, %p505_p4 }
  0x16   : > { %s179_s25 = scalar_select %p178_p11, %s438_s12, 1 }
  0x17   : > { %p371_p0 = pneg %p370_p13  ;;  %s449_s12 = smov [#allocation2]  }
  0x18   : > { %s306_s28 = sshll.u32 %s179_s25, 1  ;;  %s372_s20 = sshll.u32 %s449_s12, 4  ;;  %s373_s20 = int_to_ptr.vmem [resolvable:$false] %s372_s20 }
  0x19   : > { %s183_s3 = scalar_lea.vmem %s581_s1, %s306_s28  ;;  %s374_s23 = scalar_lea.vmem %s373_s20, 64 }
  0x1a   : > { %v184_v2 = vld [vmem:[%s183_s3] sm:$0x3]  ;;  %p375_p1 = scmp.lt.s32.totalorder %s535_s6, %s373_s20  ;;  %p376_p2 = scmp.lt.s32.totalorder %s374_s23, %s368_s18 }
  0x1c   : > { %p377_p3 = por %p376_p2, %p375_p1 }
  0x1e   : > { %p378_p5 = pnand %p377_p3, %p371_p0 }
  0x8f   : > { %v189_v3 = vpop.permute.xlu0 %188 }
  0x90   : > { %v191_v4 = vmul.f32 %v189_v3, %v184_v2 }
  0x92   : > { %192 = vst [vmem:[%s171_s5] sm:$0x3] %v191_v4 }
  0x93   : > { %381 = shalt.err (!%p378_p5)
}
  0x94   : > { %s382_s24 = scalar_lea.hbm %s533_s15, 32  ;;  %s386_s27 = scalar_lea.hbm %s582_s2, 64 }
  0x95   : > { %p383_p6 = scmp.ne.s32.totalorder %s533_s15, %s382_s24  ;;  %p387_p10 = scmp.lt.u32.totalorder %s533_s15, %s582_s2 }
  0x96   : > { %p388_p11 = scmp.lt.u32.totalorder %s386_s27, %s382_s24  ;;  %p390_p13 = scmp.lt.u32.totalorder %s382_s24, %s533_s15 }
  0x97   : > { %p384_p7 = pnand %p383_p6, %p505_p4 }
  0x98   : > { %p389_p12 = por %p388_p11, %p387_p10 }
  0x99   : > { %p385_p9 = pneg %p384_p7 }
  0x9a   : > { %p391_p0 = por %p390_p13, %p389_p12 }
  0x9c   : > { %p392_p1 = pnand %p391_p0, %p385_p9 }
  0x9e   : > { %395 = shalt.err (!%p392_p1)
}
  0x9f   : > { %311 = dma.vmem_to_hbm [thread:$0]  (%p505_p4), %s535_s6, 32, %s533_s15, %s194_s16  }
  0xa0 PF: > { %p317_p2 = scmp.ge.s32.totalorder %s446_s14, 2  ;;  %s221_s30 = sand.u32 1, %s426_s9  }
  0xa1   : > { %s222_s3 = scalar_lea.sflag [#allocation3], %s221_s30 }
  0xa2   : > { %p314_p3 = pnand %p317_p2, %p512_p8 }
  0xa4   : > { %421 = dma.done.wait (!%p314_p3), %s222_s3, 32  }
  0xa5   : > { %423 = vsyncadd (!%p314_p3), %s222_s3, 4294967264  ;;  %s15_s14 = sadd.s32 1, %s446_s14   ;;  %s585_s9 = smov %s430_s10 }
  0xa6   : > { %p12_p5 = scmp.ge.s32.totalorder %s15_s14, 4   ;;  %s586_s10 = smov %s434_s11 }
  0xa7   : > { %s587_s11 = smov %s518_s22  ;;  %s588_s12 = smov %s442_s13 }
  0xa8   : > { %s589_s13 = smov %s591_s17  ;;  %14 = sbr.rel (!%p12_p5) target bundleno = 4 (0x4), region = 66 }
  0xaf   :  { %227 = vsyncpa [#allocation3], 1 }
  0xb0   :  { %229 = vsyncpa [#allocation3 + $0x1], 1 }

</bundles_post_ra>
